<compile_context>
chip_gen: v6e
topology: v6e:2x2x1
jax: 0.10.0
libtpu: 0.0.40
codegen_flags: <defaults>
</compile_context>

<pallas_src>
import jax
import jax.numpy as jnp
from jax.experimental import pallas as pl
from jax.experimental.pallas import tpu as pltpu

_LANES = 128


def _pick_tk(d):
    """Largest K-tile (multiple of 128) that divides D; fall back to full D."""
    for tk in (2048, 1024, 512, 384, 256, 128):
        if d % tk == 0:
            return tk
    return d


# -----------------------------------------------------------------------------
# Fused kernel: (X @ W1 + b1) -> ReLU -> (@ W2p + b2p) -> gaze-loss statistics
# Grid = (M tiles, K tiles); K is the reduction axis (last, "arbitrary").
# Output slab (TM, 128): lane 0 = theta, lane 1 = phi, lane 2 = cos_sim(pred,label),
#                        lane 3 = per-row squared-error sum, lanes 4.. = 0.
# -----------------------------------------------------------------------------
def _gaze_fused_kernel(x_ref, w1_ref, b1_ref, w2_ref, b2_ref, lab_ref, o_ref, h_acc):
    k = pl.program_id(1)

    @pl.when(k == 0)
    def _init():
        h_acc[...] = jnp.zeros_like(h_acc)

    # bf16 x bf16 matmul, f32 accumulate in VMEM scratch.
    h_acc[...] += jnp.dot(x_ref[...], w1_ref[...], preferred_element_type=jnp.float32)

    @pl.when(k == pl.num_programs(1) - 1)
    def _finalize():
        h = jnp.maximum(h_acc[...] + b1_ref[...], 0.0)  # ReLU
        # W2/b2 are zero-padded to 128 output lanes -> lane-dense MXU output;
        # the real angles live in lanes 0 (theta) and 1 (phi).
        angles = jnp.dot(h, w2_ref[...], preferred_element_type=jnp.float32) + b2_ref[...]

        theta = angles[:, 0:1]
        phi = angles[:, 1:2]
        lab = lab_ref[...]
        lt = lab[:, 0:1]
        lp = lab[:, 1:2]

        # Per-row squared-error sum over the 2 angle components (MSE finished in glue).
        d_t = theta - lt
        d_p = phi - lp
        se = d_t * d_t + d_p * d_p  # (TM, 1)

        # Angles -> 3D gaze vectors; everything stays per-column elementwise
        # (no cross-lane XLU reductions). sin/cos/rsqrt go to the EUP.
        sin_t, cos_t = jnp.sin(theta), jnp.cos(theta)
        sin_p, cos_p = jnp.sin(phi), jnp.cos(phi)
        sin_lt, cos_lt = jnp.sin(lt), jnp.cos(lt)
        sin_lp, cos_lp = jnp.sin(lp), jnp.cos(lp)
        pvx, pvy, pvz = -cos_p * sin_t, -sin_p, -cos_p * cos_t
        lvx, lvy, lvz = -cos_lp * sin_lt, -sin_lp, -cos_lp * cos_lt

        dot = pvx * lvx + pvy * lvy + pvz * lvz
        pn = pvx * pvx + pvy * pvy + pvz * pvz
        ln_ = lvx * lvx + lvy * lvy + lvz * lvz
        cos_sim = jnp.clip(dot * jax.lax.rsqrt(pn * ln_ + 1e-12),
                           -1.0 + 1e-7, 1.0 - 1e-7)  # (TM, 1)

        # Pack results into one lane-dense (TM, 128) slab -> single unmasked store.
        lane = jax.lax.broadcasted_iota(jnp.int32, angles.shape, 1)
        out = jnp.where(lane >= 2,
                        jnp.where(lane == 2, cos_sim,
                                  jnp.where(lane == 3, se, 0.0)),
                        angles)
        o_ref[...] = out.astype(o_ref.dtype)


def gaze_fused_forward(x_pad, w1, b1, w2p, b2p, lab_pad):
    """x_pad: (R, D) bf16 (R multiple of 8), w1: (D, HP) bf16, lab_pad: (R, 2) f32."""
    r, d = x_pad.shape
    hp = w1.shape[1]
    tk = _pick_tk(d)
    tm = r
    # TODO(synk): for realistic resnet batches, tile M in 128-multiples (v5e) /
    # 256-multiples (v6e) so the "parallel" M axis can shard across v7x's 2 TensorCores,
    # and set pltpu.CompilerParams(vmem_limit_bytes=...) per generation.
    grid = (r // tm, d // tk)
    return pl.pallas_call(
        _gaze_fused_kernel,
        out_shape=jax.ShapeDtypeStruct((r, _LANES), jnp.float32),
        grid_spec=pltpu.PrefetchScalarGridSpec(
            num_scalar_prefetch=0,
            grid=grid,
            in_specs=[
                pl.BlockSpec((tm, tk), lambda i, k: (i, k)),       # X tile (bf16)
                pl.BlockSpec((tk, hp), lambda i, k: (k, 0)),       # W1 tile (bf16)
                pl.BlockSpec((1, hp), lambda i, k: (0, 0)),        # b1
                pl.BlockSpec((hp, _LANES), lambda i, k: (0, 0)),   # W2 (lane-padded)
                pl.BlockSpec((1, _LANES), lambda i, k: (0, 0)),    # b2 (lane-padded)
                pl.BlockSpec((tm, 2), lambda i, k: (i, 0)),        # labels (theta, phi)
            ],
            out_specs=pl.BlockSpec((tm, _LANES), lambda i, k: (i, 0)),
            scratch_shapes=[pltpu.VMEM((tm, hp), jnp.float32)],    # K-reduction accumulator
        ),
        compiler_params=pltpu.CompilerParams(
            dimension_semantics=("parallel", "arbitrary"),
        ),
    )(x_pad, w1, b1, w2p, b2p, lab_pad)


# -----------------------------------------------------------------------------
# Jitted device-side glue: pad/tile, run the fused kernel once, finish the tiny
# arccos/degrees/mean reductions in XLA.
# -----------------------------------------------------------------------------
def _gaze_losses_device(x_all_flat, labels_n2, w1, b1, w2p, b2p):
    """x_all_flat: (3N, D) f32 (streams: x, no_gd, with_gd). Returns (mse[3], ang_deg[3])."""
    rows, _ = x_all_flat.shape
    n = labels_n2.shape[0]
    r_pad = -(-rows // 8) * 8  # sublane-align rows
    x_pad = jnp.pad(x_all_flat, ((0, r_pad - rows), (0, 0))).astype(jnp.bfloat16)
    lab = jnp.pad(jnp.tile(labels_n2, (3, 1)), ((0, r_pad - rows), (0, 0)))

    slab = gaze_fused_forward(x_pad, w1, b1, w2p, b2p, lab)[:rows]
    cos_sim = slab[:, 2].reshape(3, n)
    se = slab[:, 3].reshape(3, n)

    mse = 0.5 * jnp.mean(se, axis=1)                            # MSE over (N, 2) angles
    ang = jnp.mean(jnp.degrees(jnp.arccos(cos_sim)), axis=1)    # mean angular error (deg)
    return mse, ang


_gaze_losses_jit = jax.jit(_gaze_losses_device)


class GazeDistortionLossPallas:
    """Synthetic, deterministic stand-in for GazeDistortionLoss (frozen gaze net)."""

    def __init__(self, img_shape=(3, 16, 16), hidden=32, seed=42):
        # TODO(synk): original loads pretrained GazeModel (resnet) weights from
        # model_paths['gaze']; here the frozen gaze head is synthesized deterministically.
        c, h, w = img_shape
        d = c * h * w
        hp = -(-hidden // _LANES) * _LANES  # pad hidden to a lane-dense multiple of 128
        k1, k2, k3, k4 = jax.random.split(jax.random.PRNGKey(seed), 4)
        w1 = jax.random.normal(k1, (d, hidden), jnp.float32) * (1.0 / d ** 0.5)
        b1 = jax.random.normal(k2, (1, hidden), jnp.float32) * 0.01
        w2 = jax.random.normal(k3, (hidden, 2), jnp.float32) * (1.0 / hidden ** 0.5)
        b2 = jax.random.normal(k4, (1, 2), jnp.float32) * 0.01
        # Frozen weights padded/cast ONCE here: hidden -> 128 lanes, W2/b2 outputs -> 128
        # lanes (angles in lanes 0-1); W1 stored in bf16 (f32 accumulate in-kernel).
        self.w1 = jnp.pad(w1, ((0, 0), (0, hp - hidden))).astype(jnp.bfloat16)
        self.b1 = jnp.pad(b1, ((0, 0), (0, hp - hidden)))
        self.w2p = jnp.pad(w2, ((0, hp - hidden), (0, _LANES - 2)))
        self.b2p = jnp.pad(b2, ((0, 0), (0, _LANES - 2)))

    def extract_feats(self, x_nchw):
        """Standalone gaze-net forward (API parity); forward() batches all 3 images."""
        n = x_nchw.shape[0]
        x_flat = x_nchw.reshape(n, -1).astype(jnp.float32)
        r_pad = -(-n // 8) * 8
        x_pad = jnp.pad(x_flat, ((0, r_pad - n), (0, 0))).astype(jnp.bfloat16)
        lab = jnp.zeros((r_pad, 2), jnp.float32)
        slab = gaze_fused_forward(x_pad, self.w1, self.b1, self.w2p, self.b2p, lab)
        return slab[:n, :2]  # (theta, phi)

    def forward(self, x, img_no_gd, img_with_gd, labels):
        n_samples = x.shape[0]
        labels_stacked = jnp.stack([labels[0], labels[1]], axis=1).astype(jnp.float32)

        # Batch the three forward passes into one (3N, D) kernel call.
        x_all = jnp.concatenate([x, img_no_gd, img_with_gd], axis=0)
        x_all_flat = x_all.reshape(3 * n_samples, -1).astype(jnp.float32)
        mse, ang = _gaze_losses_jit(x_all_flat, labels_stacked,
                                    self.w1, self.b1, self.w2p, self.b2p)

        gaze_loss_x, gaze_loss_no_gd, gaze_loss_with_gd = mse[0], mse[1], mse[2]
        angular_error_x, angular_error_no_gd, angular_error_with_gd = ang[0], ang[1], ang[2]

        # The original per-sample loop recomputes the identical full-batch loss every
        # iteration and sums it, so the accumulated sum == n_samples * value (hoisted).
        ns = jnp.float32(n_samples)
        loss_x = ns * gaze_loss_x
        loss_no_gd = ns * gaze_loss_no_gd
        loss_with_gd = ns * gaze_loss_with_gd

        # Single host readback for the logs (3 floats total, not 3*n_samples blocking
        # device->host syncs inside the loop).
        ax = float(angular_error_x)
        an = float(angular_error_no_gd)
        aw = float(angular_error_with_gd)
        gd_logs = []
        for _ in range(n_samples):
            gd_logs.append({'angular_x': ax})
            gd_logs.append({'angular_no_gd': an})
            gd_logs.append({'angular_with_gd': aw})

        loss_gaze = {'x': loss_x, 'no_gd': loss_no_gd, 'with_gd': loss_with_gd}
        # Original returns only the last iteration's angular errors (all identical here).
        loss_ang = {'x_ang': angular_error_x, 'no_gd_ang': angular_error_no_gd,
                    'with_gd_ang': angular_error_with_gd}
        return loss_gaze, loss_ang, gd_logs


if __name__ == "__main__":
    key = jax.random.PRNGKey(0)
    k1, k2, k3, k4 = jax.random.split(key, 4)

    N, C, H, W = 2, 3, 16, 16
    x = jax.random.normal(k1, (N, C, H, W), jnp.float32)
    img_no_gd = jax.random.normal(k2, (N, C, H, W), jnp.float32)
    img_with_gd = jax.random.normal(k3, (N, C, H, W), jnp.float32)
    # labels passed as [theta_row, phi_row] -> shape (2, N), matching labels[0]/labels[1].
    labels = 0.3 * jax.random.normal(k4, (2, N), jnp.float32)

    module = GazeDistortionLossPallas(img_shape=(C, H, W), hidden=32, seed=42)
    loss_gaze, loss_ang, gd_logs = module.forward(x, img_no_gd, img_with_gd, labels)

    for v in list(loss_gaze.values()) + list(loss_ang.values()):
        jax.block_until_ready(v)

    print("KERNEL_OK")
</pallas_src>

<mosaic_0001>
module attributes {stable_mosaic.version = 11 : i64} {
  func.func @_gaze_fused_kernel(%arg0: i32, %arg1: i32, %arg2: memref<8x384xbf16, #tpu.memory_space<vmem>>, %arg3: memref<384x128xbf16, #tpu.memory_space<vmem>>, %arg4: memref<1x128xf32, #tpu.memory_space<vmem>>, %arg5: memref<128x128xf32, #tpu.memory_space<vmem>>, %arg6: memref<1x128xf32, #tpu.memory_space<vmem>>, %arg7: memref<8x2xf32, #tpu.memory_space<vmem>>, %arg8: memref<8x128xf32, #tpu.memory_space<vmem>>, %arg9: memref<8x128xf32, #tpu.memory_space<vmem>>) attributes {dimension_semantics = [#tpu.dimension_semantics<parallel>, #tpu.dimension_semantics<arbitrary>], iteration_bounds = array<i64: 1, 2>, scalar_prefetch = 0 : i64, scratch_operands = 1 : i64, tpu.core_type = #tpu.core_type<tc>, window_params = [{transform_indices = @transform_0, window_bounds = array<i64: 8, 384>}, {transform_indices = @transform_1, window_bounds = array<i64: 384, 128>}, {pipeline_mode = #tpu.pipeline_mode<synchronous>, transform_indices = @transform_2, window_bounds = array<i64: 1, 128>}, {pipeline_mode = #tpu.pipeline_mode<synchronous>, transform_indices = @transform_3, window_bounds = array<i64: 128, 128>}, {pipeline_mode = #tpu.pipeline_mode<synchronous>, transform_indices = @transform_4, window_bounds = array<i64: 1, 128>}, {transform_indices = @transform_5, window_bounds = array<i64: 8, 2>}, {transform_indices = @transform_6, window_bounds = array<i64: 8, 128>}]} {
    %c0_i32 = arith.constant 0 : i32
    %0 = arith.cmpi eq, %arg1, %c0_i32 : i32
    %1 = arith.extui %0 : i1 to i32
    %c0_i32_0 = arith.constant 0 : i32
    %2 = arith.cmpi ne, %1, %c0_i32_0 : i32
    scf.if %2 {
      %cst_9 = arith.constant 0.000000e+00 : f32
      %12 = vector.broadcast %cst_9 : f32 to vector<8x128xf32>
      %c0_10 = arith.constant 0 : index
      %c0_11 = arith.constant 0 : index
      %13 = vector.load %arg9[%c0_10, %c0_11] : memref<8x128xf32, #tpu.memory_space<vmem>>, vector<8x128xf32>
      tpu.vector_store %arg9[%c0_10, %c0_11], %12 {strides = array<i32>} : memref<8x128xf32, #tpu.memory_space<vmem>>, vector<8x128xf32>,
    } else {
    }
    %c0 = arith.constant 0 : index
    %c0_1 = arith.constant 0 : index
    %3 = vector.load %arg9[%c0, %c0_1] : memref<8x128xf32, #tpu.memory_space<vmem>>, vector<8x128xf32>
    %c0_2 = arith.constant 0 : index
    %c0_3 = arith.constant 0 : index
    %4 = vector.load %arg2[%c0_2, %c0_3] : memref<8x384xbf16, #tpu.memory_space<vmem>>, vector<8x384xbf16>
    %c0_4 = arith.constant 0 : index
    %c0_5 = arith.constant 0 : index
    %5 = vector.load %arg3[%c0_4, %c0_5] : memref<384x128xbf16, #tpu.memory_space<vmem>>, vector<384x128xbf16>
    %cst = arith.constant dense<0.000000e+00> : vector<8x128xf32>
    %6 = tpu.matmul %4, %5, %cst {dimension_numbers = #tpu.dot_dimension_numbers<[1], [0], [0], [1], [0, 0, 1, 1], [], []>} : vector<8x384xbf16>, vector<384x128xbf16>, vector<8x128xf32> -> vector<8x128xf32>
    %7 = arith.addf %3, %6 : vector<8x128xf32>
    %c0_6 = arith.constant 0 : index
    %c0_7 = arith.constant 0 : index
    %8 = vector.load %arg9[%c0_6, %c0_7] : memref<8x128xf32, #tpu.memory_space<vmem>>, vector<8x128xf32>
    tpu.vector_store %arg9[%c0_6, %c0_7], %7 {strides = array<i32>} : memref<8x128xf32, #tpu.memory_space<vmem>>, vector<8x128xf32>,
    %c1_i32 = arith.constant 1 : i32
    %9 = arith.cmpi eq, %arg1, %c1_i32 : i32
    %10 = arith.extui %9 : i1 to i32
    %c0_i32_8 = arith.constant 0 : i32
    %11 = arith.cmpi ne, %10, %c0_i32_8 : i32
    scf.if %11 {
      %c0_9 = arith.constant 0 : index
      %c0_10 = arith.constant 0 : index
      %12 = vector.load %arg9[%c0_9, %c0_10] : memref<8x128xf32, #tpu.memory_space<vmem>>, vector<8x128xf32>
      %c0_11 = arith.constant 0 : index
      %c0_12 = arith.constant 0 : index
      %13 = vector.load %arg4[%c0_11, %c0_12] : memref<1x128xf32, #tpu.memory_space<vmem>>, vector<1x128xf32>
      %14 = vector.broadcast %13 : vector<1x128xf32> to vector<8x128xf32>
      %15 = arith.addf %12, %14 : vector<8x128xf32>
      %cst_13 = arith.constant 0.000000e+00 : f32
      %16 = vector.broadcast %cst_13 : f32 to vector<8x128xf32>
      %17 = arith.maximumf %15, %16 : vector<8x128xf32>
      %c0_14 = arith.constant 0 : index
      %c0_15 = arith.constant 0 : index
      %18 = vector.load %arg5[%c0_14, %c0_15] : memref<128x128xf32, #tpu.memory_space<vmem>>, vector<128x128xf32>
      %cst_16 = arith.constant dense<0.000000e+00> : vector<8x128xf32>
      %19 = tpu.matmul %17, %18, %cst_16 {dimension_numbers = #tpu.dot_dimension_numbers<[1], [0], [0], [1], [0, 0, 1, 1], [], []>} : vector<8x128xf32>, vector<128x128xf32>, vector<8x128xf32> -> vector<8x128xf32>
      %c0_17 = arith.constant 0 : index
      %c0_18 = arith.constant 0 : index
      %20 = vector.load %arg6[%c0_17, %c0_18] : memref<1x128xf32, #tpu.memory_space<vmem>>, vector<1x128xf32>
      %21 = vector.broadcast %20 : vector<1x128xf32> to vector<8x128xf32>
      %22 = arith.addf %19, %21 : vector<8x128xf32>
      %23 = vector.extract_strided_slice %22 {offsets = [0, 0], sizes = [8, 1], strides = [1, 1]} : vector<8x128xf32> to vector<8x1xf32>
      %24 = vector.extract_strided_slice %22 {offsets = [0, 1], sizes = [8, 1], strides = [1, 1]} : vector<8x128xf32> to vector<8x1xf32>
      %c0_19 = arith.constant 0 : index
      %c0_20 = arith.constant 0 : index
      %25 = vector.load %arg7[%c0_19, %c0_20] : memref<8x2xf32, #tpu.memory_space<vmem>>, vector<8x2xf32>
      %26 = vector.extract_strided_slice %25 {offsets = [0, 0], sizes = [8, 1], strides = [1, 1]} : vector<8x2xf32> to vector<8x1xf32>
      %27 = vector.extract_strided_slice %25 {offsets = [0, 1], sizes = [8, 1], strides = [1, 1]} : vector<8x2xf32> to vector<8x1xf32>
      %28 = arith.subf %23, %26 : vector<8x1xf32>
      %29 = arith.subf %24, %27 : vector<8x1xf32>
      %30 = arith.mulf %28, %28 : vector<8x1xf32>
      %31 = arith.mulf %29, %29 : vector<8x1xf32>
      %32 = arith.addf %30, %31 : vector<8x1xf32>
      %33 = math.sin %23 : vector<8x1xf32>
      %34 = math.cos %23 : vector<8x1xf32>
      %35 = math.sin %24 : vector<8x1xf32>
      %36 = math.cos %24 : vector<8x1xf32>
      %37 = math.sin %26 : vector<8x1xf32>
      %38 = math.cos %26 : vector<8x1xf32>
      %39 = math.sin %27 : vector<8x1xf32>
      %40 = math.cos %27 : vector<8x1xf32>
      %cst_21 = arith.constant 0.000000e+00 : f32
      %41 = vector.broadcast %cst_21 : f32 to vector<8x1xf32>
      %42 = arith.subf %41, %36 : vector<8x1xf32>
      %43 = arith.mulf %42, %33 : vector<8x1xf32>
      %cst_22 = arith.constant 0.000000e+00 : f32
      %44 = vector.broadcast %cst_22 : f32 to vector<8x1xf32>
      %45 = arith.subf %44, %35 : vector<8x1xf32>
      %cst_23 = arith.constant 0.000000e+00 : f32
      %46 = vector.broadcast %cst_23 : f32 to vector<8x1xf32>
      %47 = arith.subf %46, %36 : vector<8x1xf32>
      %48 = arith.mulf %47, %34 : vector<8x1xf32>
      %cst_24 = arith.constant 0.000000e+00 : f32
      %49 = vector.broadcast %cst_24 : f32 to vector<8x1xf32>
      %50 = arith.subf %49, %40 : vector<8x1xf32>
      %51 = arith.mulf %50, %37 : vector<8x1xf32>
      %cst_25 = arith.constant 0.000000e+00 : f32
      %52 = vector.broadcast %cst_25 : f32 to vector<8x1xf32>
      %53 = arith.subf %52, %39 : vector<8x1xf32>
      %cst_26 = arith.constant 0.000000e+00 : f32
      %54 = vector.broadcast %cst_26 : f32 to vector<8x1xf32>
      %55 = arith.subf %54, %40 : vector<8x1xf32>
      %56 = arith.mulf %55, %38 : vector<8x1xf32>
      %57 = arith.mulf %43, %51 : vector<8x1xf32>
      %58 = arith.mulf %45, %53 : vector<8x1xf32>
      %59 = arith.addf %57, %58 : vector<8x1xf32>
      %60 = arith.mulf %48, %56 : vector<8x1xf32>
      %61 = arith.addf %59, %60 : vector<8x1xf32>
      %62 = arith.mulf %43, %43 : vector<8x1xf32>
      %63 = arith.mulf %45, %45 : vector<8x1xf32>
      %64 = arith.addf %62, %63 : vector<8x1xf32>
      %65 = arith.mulf %48, %48 : vector<8x1xf32>
      %66 = arith.addf %64, %65 : vector<8x1xf32>
      %67 = arith.mulf %51, %51 : vector<8x1xf32>
      %68 = arith.mulf %53, %53 : vector<8x1xf32>
      %69 = arith.addf %67, %68 : vector<8x1xf32>
      %70 = arith.mulf %56, %56 : vector<8x1xf32>
      %71 = arith.addf %69, %70 : vector<8x1xf32>
      %72 = arith.mulf %66, %71 : vector<8x1xf32>
      %cst_27 = arith.constant 9.99999996E-13 : f32
      %73 = vector.broadcast %cst_27 : f32 to vector<8x1xf32>
      %74 = arith.addf %72, %73 : vector<8x1xf32>
      %75 = math.rsqrt %74 : vector<8x1xf32>
      %76 = arith.mulf %61, %75 : vector<8x1xf32>
      %cst_28 = arith.constant -0.99999988 : f32
      %cst_29 = arith.constant 0.99999988 : f32
      %77 = vector.broadcast %cst_28 : f32 to vector<8x1xf32>
      %78 = arith.maximumf %77, %76 : vector<8x1xf32>
      %79 = vector.broadcast %cst_29 : f32 to vector<8x1xf32>
      %80 = arith.minimumf %79, %78 : vector<8x1xf32>
      %81 = tpu.iota {dimensions = array<i32: 1>} : vector<8x128xi32>
      %c2_i32 = arith.constant 2 : i32
      %82 = vector.broadcast %c2_i32 : i32 to vector<8x128xi32>
      %83 = arith.cmpi sge, %81, %82 : vector<8x128xi32>
      %c2_i32_30 = arith.constant 2 : i32
      %84 = vector.broadcast %c2_i32_30 : i32 to vector<8x128xi32>
      %85 = arith.cmpi eq, %81, %84 : vector<8x128xi32>
      %c3_i32 = arith.constant 3 : i32
      %86 = vector.broadcast %c3_i32 : i32 to vector<8x128xi32>
      %87 = arith.cmpi eq, %81, %86 : vector<8x128xi32>
      %cst_31 = arith.constant 0.000000e+00 : f32
      %88 = vector.shape_cast %32 : vector<8x1xf32> to vector<8x1xf32>
      %89 = vector.broadcast %88 : vector<8x1xf32> to vector<8x128xf32>
      %90 = vector.broadcast %cst_31 : f32 to vector<8x128xf32>
      %91 = arith.select %87, %89, %90 : vector<8x128xi1>, vector<8x128xf32>
      %92 = vector.shape_cast %80 : vector<8x1xf32> to vector<8x1xf32>
      %93 = vector.broadcast %92 : vector<8x1xf32> to vector<8x128xf32>
      %94 = arith.select %85, %93, %91 : vector<8x128xi1>, vector<8x128xf32>
      %95 = arith.select %83, %94, %22 : vector<8x128xi1>, vector<8x128xf32>
      %c0_32 = arith.constant 0 : index
      %c0_33 = arith.constant 0 : index
      %96 = vector.load %arg8[%c0_32, %c0_33] : memref<8x128xf32, #tpu.memory_space<vmem>>, vector<8x128xf32>
      tpu.vector_store %arg8[%c0_32, %c0_33], %95 {strides = array<i32>} : memref<8x128xf32, #tpu.memory_space<vmem>>, vector<8x128xf32>,
    } else {
    }
    return
  }
  func.func @transform_0(%arg0: i32, %arg1: i32) -> (i32, i32) {
    %c0_i32 = arith.constant 0 : i32
    return %arg0, %arg1 : i32, i32
  }
  func.func @transform_1(%arg0: i32, %arg1: i32) -> (i32, i32) {
    %c0_i32 = arith.constant 0 : i32
    %c0_i32_0 = arith.constant 0 : i32
    return %arg1, %c0_i32 : i32, i32
  }
  func.func @transform_2(%arg0: i32, %arg1: i32) -> (i32, i32) {
    %c0_i32 = arith.constant 0 : i32
    %c0_i32_0 = arith.constant 0 : i32
    %c0_i32_1 = arith.constant 0 : i32
    return %c0_i32, %c0_i32_0 : i32, i32
  }
  func.func @transform_3(%arg0: i32, %arg1: i32) -> (i32, i32) {
    %c0_i32 = arith.constant 0 : i32
    %c0_i32_0 = arith.constant 0 : i32
    %c0_i32_1 = arith.constant 0 : i32
    return %c0_i32, %c0_i32_0 : i32, i32
  }
  func.func @transform_4(%arg0: i32, %arg1: i32) -> (i32, i32) {
    %c0_i32 = arith.constant 0 : i32
    %c0_i32_0 = arith.constant 0 : i32
    %c0_i32_1 = arith.constant 0 : i32
    return %c0_i32, %c0_i32_0 : i32, i32
  }
  func.func @transform_5(%arg0: i32, %arg1: i32) -> (i32, i32) {
    %c0_i32 = arith.constant 0 : i32
    %c0_i32_0 = arith.constant 0 : i32
    return %arg0, %c0_i32 : i32, i32
  }
  func.func @transform_6(%arg0: i32, %arg1: i32) -> (i32, i32) {
    %c0_i32 = arith.constant 0 : i32
    %c0_i32_0 = arith.constant 0 : i32
    return %arg0, %c0_i32 : i32, i32
  }
}

</mosaic_0001>

<bundles_post_ra>
// kernel: tile.9
= control target key start
LH: loop header
LB: loop body
LE: loop exit
PB: predicated region body
PF: predicated region fallthrough
CT: control target
= control target key end

     0   :  { %s11_s10 = smov 3  ;;  %vm13_vm0 = vcmask 15360   ;;  %s23_s11 = smov 3  ;;  %vm20_vm1 = vcmask 48160   ;;  %vm27_vm2 = vcmask 31760   ;;  %s61_s0 = inlined_call_operand.vmem [shape: f32[3,2,2], index: 0, kind: input, shape index: {}]   ;;  %s62_s1 = inlined_call_operand.vmem [shape: f32[6,2], index: 1, kind: output, shape index: {}]  }
   0x1   :  { %v37_v0 = vld [vmem:[%s61_s0 + $0x4] sm:$0xf]  ;;  %v9_v1 = vld [vmem:[%s61_s0] sm:$0xf]  ;;  %s16_s0 = smov 3  ;;  %s40_s12 = smov 4  }
   0x2   :  { %8 = vst [vmem:[#allocation1 + $0x8] sm:$0xf] %v37_v0  ;;  %10 = vst [vmem:[#allocation1] sm:$0xf] %v9_v1  ;;  %s41_s13 = smov 2  }
   0x9   :  { %v17_v2 = vld [vmem:[#allocation1 + $0x2] ss:$8 sm:%s16_s0]   ;;  %v12_v3 = vld [vmem:[#allocation1] ss:$8 sm:%s11_s10]   ;;  %v24_v4 = vld [vmem:[#allocation1 + $0x1] ss:$8 sm:%s23_s11]  }
   0xa   :  { %18 = vrot.lane.b32.xlu0 %v17_v2, %s40_s12  ;;  %14 = vst.msk [vmem:[#allocation0] sm:$0x3] %vm13_vm0, %v12_v3  }
   0xe   :  { %25 = vrot.lane.b32.xlu0 %v24_v4, %s41_s13 }
  0x7c   :  { %v19_v5 = vpop.permute.xlu0 %18  }
  0x7d   :  { %21 = vst.msk [vmem:[#allocation0] sm:$0x3] %vm20_vm1, %v19_v5  }
  0x80   :  { %v26_v6 = vpop.permute.xlu0 %25  }
  0x81   :  { %28 = vst.msk [vmem:[#allocation0] sm:$0x3] %vm27_vm2, %v26_v6  }
  0x88   :  { %v33_v7 = vld [vmem:[#allocation0] sm:$0x3] }
  0x89   :  { %36 = vst [vmem:[%s62_s1] sm:$0x3] %v33_v7 }

// kernel: squeeze.2
= control target key start
LH: loop header
LB: loop body
LE: loop exit
PB: predicated region body
PF: predicated region fallthrough
CT: control target
= control target key end

     0   :  { %vm8_vm0 = vcmask 15360   ;;  %s33_s8 = smov 124   ;;  %s50_s0 = inlined_call_operand.vmem [shape: f32[6], index: 0, kind: input, shape index: {}]   ;;  %s51_s1 = inlined_call_operand.vmem [shape: f32[3,2], index: 1, kind: output, shape index: {}]  }
   0x1   :  { %v5_v0 = vld [vmem:[%s50_s0] sm:$0x1]  ;;  %s32_s0 = smov 126  }
   0x2   :  { %6 = vst [vmem:[#allocation1] sm:$0x1] %v5_v0 }
   0x9   :  { %v10_v1 = vld [vmem:[#allocation1] sm:$0x1]  }
   0xa   :  { %v7_v2 = vld [vmem:[#allocation1] sm:$0x1]   ;;  %11 = vrot.lane.b32.xlu0 %v10_v1, %s32_s0 }
   0xb   :  { %9 = vst.msk [vmem:[#allocation0] sm:$0x1] %vm8_vm0, %v7_v2   ;;  %v16_v3 = vld [vmem:[#allocation1] sm:$0x1]  }
   0xe   :  { %17 = vrot.lane.b32.xlu0 %v16_v3, %s33_s8 }
  0x7c   :  { %v12_v4 = vpop.permute.xlu0 %11  }
  0x7d   :  { %15 = vst.msk [vmem:[#allocation0 + $0x1] sm:$0x1] %vm8_vm0, %v12_v4  }
  0x80   :  { %v18_v5 = vpop.permute.xlu0 %17  }
  0x81   :  { %21 = vst.msk [vmem:[#allocation0 + $0x2] sm:$0x1] %vm8_vm0, %v18_v5  }
  0x88   :  { %v26_v6 = vld [vmem:[#allocation0] sm:$0xf] }
  0x89   :  { %29 = vst [vmem:[%s51_s1] sm:$0xf] %v26_v6 }

// kernel: _gaze_losses_device.1
= control target key start
LH: loop header
LB: loop body
LE: loop exit
PB: predicated region body
PF: predicated region fallthrough
CT: control target
= control target key end

     0   :  { %11 = vsyncpa [#allocation4], 0  ;;  %s2030_s0 = inlined_call_operand.vmem [shape: bf16[8,768], index: 0, kind: input, shape index: {}]   ;;  %s2031_s1 = inlined_call_operand.hbm [shape: bf16[768,128], index: 1, kind: input, shape index: {}]   ;;  %s2032_s2 = inlined_call_operand.vmem [shape: f32[1,128], index: 2, kind: input, shape index: {}]   ;;  %s2033_s3 = inlined_call_operand.vmem [shape: f32[128,128], index: 3, kind: input, shape index: {}]   ;;  %s2034_s4 = inlined_call_operand.vmem [shape: f32[1,128], index: 4, kind: input, shape index: {}]   ;;  %s2035_s5 = inlined_call_operand.vmem [shape: f32[8,2], index: 5, kind: input, shape index: {}]   ;;  %s2036_s6 = inlined_call_operand.vmem [shape: f32[8,128], index: 6, kind: output, shape index: {}]  }
   0x1   :  { %13 = vsyncpa [#allocation4 + $0x1], 0  ;;  %s1742_s21 = smov 0   ;;  %s1744_s22 = smov 0  }
   0x2   :  { %s1746_s23 = smov 0   ;;  %s1748_s24 = smov 0  }
   0x3   :  { %s1750_s25 = smov 0   ;;  %s1752_s26 = smov 0  }
   0x4 LB: > { %s1326_s27 = sadd.s32 4294967295, %s1687_s26   ;;  %s28_s28 = sadd.s32 1, %s1683_s25  ;;  %s1687_s26 = sphi %s1752_s26, %s19_s26   ;;  %s1683_s25 = sphi %s1750_s25, %s2045_s25   ;;  %s1679_s24 = sphi %s1748_s24, %s2044_s24   ;;  %s1675_s23 = sphi %s1746_s23, %s2043_s23   ;;  %s1671_s22 = sphi %s1744_s22, %s2042_s22   ;;  %s1667_s21 = sphi %s1742_s21, %s2041_s21  }
   0x5   : > { %p29_p0 = scmp.ge.s32.totalorder %s28_s28, 2  ;;  %s66_s29 = sadd.s32 1, %s1675_s23 }
   0x6   : > { %p73_p1 = scmp.ne.s32.totalorder %s1675_s23, %s1671_s22  ;;  %p74_p2 = scmp.eq.s32.totalorder %s1687_s26, 0 }
   0x7   : > { %s2047_s28 = smov (%p29_p0, %s28_s28), 0  ;;  %p79_p4 = scmp.ne.s32.totalorder %s1671_s22, %s1667_s21 }
   0x8   : > { %p75_p3 = por %p74_p2, %p73_p1  ;;  %s63_s30 = ssub.s32 %s1683_s25, %s2047_s28 }
   0x9   : > { %p80_p5 = scmp.eq.s32.totalorder %s1326_s27, 0  ;;  %p64_p6 = scmp.eq.s32.totalorder %s63_s30, 0 }
   0xa   : > { %p1504_p8 = scmp.lt.s32.totalorder %s1687_s26, 2  ;;  %s247_s9 = sand.u32 1, %s1675_s23  }
   0xb   : > { %p1781_p7 = por %p80_p5, %p79_p4  ;;  %s1384_s10 = smul.u32 3072, %s1683_s25 }
   0xc   : > { %s1787_s8 = scalar_select %p64_p6, %s1675_s23, %s66_s29  }
   0xd   : > { %s1488_s11 = smul.u32 192, %s247_s9  ;;  %s257_s14 = scalar_lea.hbm %s2031_s1, %s1384_s10 }
   0xe   : > { %p1794_p9 = pnand %p1504_p8, %p75_p3  ;;  %s248_s18 = scalar_lea.sflag [#allocation4], %s247_s9 }
   0xf   : > { %s251_s16 = scalar_lea.vmem [#allocation3], %s1488_s11  ;;  %s1689_s20 = smov [#allocation3]  }
  0x10   : > { %s258_s17 = sshll.u32 %s251_s16, 4  ;;  %p1611_p10 = pneg %p1794_p9  ;;  %s259_s17 = int_to_ptr.vmem [resolvable:$true] %s258_s17 }
  0x11   : > { %s1622_s19 = scalar_lea.vmem %s259_s17, 3072  ;;  %s1627_s21 = sshll.u32 %s1689_s20, 4  ;;  %s1628_s21 = int_to_ptr.vmem [resolvable:$false] %s1627_s21 }
  0x12   : > { %p1623_p11 = scmp.ne.s32.totalorder %s259_s17, %s1622_s19  ;;  %s1629_s27 = scalar_lea.vmem %s1628_s21, 6144 }
  0x13   : > { %p1630_p0 = scmp.lt.s32.totalorder %s259_s17, %s1628_s21  ;;  %p1631_p1 = scmp.lt.s32.totalorder %s1629_s27, %s1622_s19 }
  0x14   : > { %p1625_p12 = pnand %p1623_p11, %p1611_p10 }
  0x15   : > { %p1632_p2 = por %p1631_p1, %p1630_p0 }
  0x16   : > { %p1626_p13 = pneg %p1625_p12 }
  0x18   : > { %p1633_p3 = pnand %p1632_p2, %p1626_p13 }
  0x1a   : > { %1636 = shalt.err (!%p1633_p3)
}
  0x1b   : > { %s1690_s29 = smov 64   ;;  %s1691_s30 = smov 4  }
  0x1c   : > { %1503 = dma.hbm_to_vmem [thread:$0]  (!%p1794_p9), %s257_s14, 3072, %s259_s17, %s248_s18, %s1690_s29, %s1690_s29, %s1691_s30  }
  0x1d   : > { %p1331_p4 = scmp.ge.s32.totalorder %s1687_s26, 1  ;;  %p266_p5 = scmp.lt.s32.totalorder %s1687_s26, 3 }
  0x1f   : > { %p267_p6 = pnand %p1331_p4, %p266_p5 }
  0x20   : > { %s272_s9 = sand.u32 (!%p267_p6), 1, %s1671_s22  }
  0x21   : > { %270 = sbr.rel (%p267_p6) target bundleno = 871 (0x367), region = 44  ;;  %s273_s11 = scalar_lea.sflag (!%p267_p6), [#allocation4], %s272_s9 }
  0x22   : > { %s1489_s10 = smul.u32 (!%p267_p6), 192, %s272_s9 }
  0x24   : > { %s1805_s12 = scalar_lea.vmem (!%p267_p6), [#allocation3], %s1489_s10 }
  0x26   : > { %1662 = dma.done.wait (%p1781_p7), %s273_s11, 3072  }
  0x27   : > { %1664 = vsyncadd (%p1781_p7), %s273_s11, 4294964224  ;;  %s317_s13 = smul.u32 3, %s1679_s24  ;;  %p1333_p9 = scmp.ne.s32.totalorder %s1679_s24, 0 }
  0x29   : > { %p320_p8 = scmp.lt.s32.totalorder %s317_s13, 5  ;;  %340 = sbr.rel (%p1333_p9) target bundleno = 48 (0x30), region = 52 }
  0x2b   : > { %s2049_s13 = smov (!%p320_p8, %s317_s13), 5 }
  0x2c   : > { %s1332_s14 = sshll.u32 %s2049_s13, 2 }
  0x2d   : > { %s1815_s17 = scalar_lea.vmem %s2030_s0, %s1332_s14 }
  0x2e   : > { %v1692_v0 = vmov 0.0  }
  0x2f   : > { %341 = vst [vmem:[#allocation2] sm:$0xff] %v1692_v0 }
  0x30 PF: > { %v1570_v1 = vld [vmem:[%s1805_s12 + $0x78] sm:$0xff]   ;;  %v1693_v2 = vmov 0.0   ;;  %vm1694_vm0 = vmmov 0   ;;  %v1573_v5 = vld [vmem:[%s1805_s12 + $0x70] sm:$0xff]   ;;  %v1576_v8 = vld [vmem:[%s1805_s12 + $0x68] sm:$0xff]   ;;  %p1361_p7 = scmp.ne.s32.totalorder %s1679_s24, 1 }
  0x31   : > { %1433 = vmatprep.subr.bf16.mxu1 %v1693_v2  ;;  %v1571_v3 = vld [vmem:[%s1805_s12 + $0xb8] sm:$0xff]   ;;  %1385 = vmatprep.subr.bf16.mxu0 %v1570_v1  ;;  %v1574_v6 = vld [vmem:[%s1805_s12 + $0xb0] sm:$0xff]   ;;  %v1577_v9 = vld [vmem:[%s1805_s12 + $0xa8] sm:$0xff]   ;;  %s1704_s19 = smov (!%p1361_p7), 1   ;;  %s1706_s20 = smov (!%p1361_p7), 127  }
  0x32   : > { %v1572_v4 = vld [vmem:[%s1805_s12 + $0x38] sm:$0xff]   ;;  %1449 = vmatprep.mubr.msk.bf16.mxu1 %vm1694_vm0, %v1693_v2  ;;  %1434 = vmatpush3.bf16.msra.mxu1 %v1571_v3  ;;  %v1575_v7 = vld [vmem:[%s1805_s12 + $0x30] sm:$0xff]   ;;  %v1578_v10 = vld [vmem:[%s1805_s12 + $0x28] sm:$0xff]  }
  0x33   : > { %1386 = vmatpush3.bf16.msra.mxu0 %v1572_v4  ;;  %1435 = vmatprep.subr.bf16.mxu1 %v1693_v2  ;;  %v1579_v11 = vld [vmem:[%s1805_s12 + $0x60] sm:$0xff]   ;;  %v1582_v14 = vld [vmem:[%s1805_s12 + $0x58] sm:$0xff]   ;;  %v1585_v17 = vld [vmem:[%s1805_s12 + $0x50] sm:$0xff]  }
  0x34   : > { %1387 = vmatprep.subr.bf16.mxu0 %v1573_v5  ;;  %v1580_v12 = vld [vmem:[%s1805_s12 + $0xa0] sm:$0xff]   ;;  %v1583_v15 = vld [vmem:[%s1805_s12 + $0x98] sm:$0xff]   ;;  %v1586_v18 = vld [vmem:[%s1805_s12 + $0x90] sm:$0xff]  }
  0x35   : > { %v1581_v13 = vld [vmem:[%s1805_s12 + $0x20] sm:$0xff]   ;;  %v1584_v16 = vld [vmem:[%s1805_s12 + $0x18] sm:$0xff]   ;;  %v1587_v19 = vld [vmem:[%s1805_s12 + $0x10] sm:$0xff]  }
  0x36   : > { %1436 = vmatpush3.bf16.msra.mxu1 %v1574_v6  ;;  %v1588_v20 = vld [vmem:[%s1805_s12 + $0x48] sm:$0xff]   ;;  %v343_v23 = vld [vmem:[%s1815_s17] sm:$0xff]  ;;  %v1591_v24 = vld [vmem:[%s1805_s12 + $0x40] sm:$0xff]  }
  0x37   : > { %1388 = vmatpush3.bf16.msra.mxu0 %v1575_v7  ;;  %1437 = vmatprep.subr.bf16.mxu1 %v1693_v2  ;;  %v1589_v21 = vld [vmem:[%s1805_s12 + $0x88] sm:$0xff]   ;;  %v1335_v25 = vcombine.high %v343_v23, %v343_v23  ;;  %v1592_v26 = vld [vmem:[%s1805_s12 + $0x80] sm:$0xff]   ;;  %v1334_v29 = vcombine.low %v343_v23, %v343_v23  ;;  %v342_v36 = vld [vmem:[#allocation2] sm:$0xff] }
  0x38   : > { %1389 = vmatprep.subr.bf16.mxu0 %v1576_v8  ;;  %v1590_v22 = vld [vmem:[%s1805_s12 + $0x8] sm:$0xff]   ;;  %v1593_v27 = vld [vmem:[%s1805_s12] sm:$0xff]  }
  0x39   : > { %580 = vmatprep.mubr.bf16.mxu0 %v1335_v25  ;;  %v1596_v28 = vld [vmem:[%s1815_s17 + $0x8] ss:$0 sps:$4 sm:$0xff]  }
  0x3a   : > { %1438 = vmatpush3.bf16.msra.mxu1 %v1577_v9 }
  0x3b   : > { %1390 = vmatpush3.bf16.msra.mxu0 %v1578_v10  ;;  %1439 = vmatprep.subr.bf16.mxu1 %v1693_v2 }
  0x3c   : > { %1391 = vmatprep.subr.bf16.mxu0 %v1579_v11 }
  0x3e   : > { %1440 = vmatpush3.bf16.msra.mxu1 %v1580_v12 }
  0x3f   : > { %1392 = vmatpush3.bf16.msra.mxu0 %v1581_v13  ;;  %1441 = vmatprep.subr.bf16.mxu1 %v1693_v2 }
  0x40   : > { %1393 = vmatprep.subr.bf16.mxu0 %v1582_v14 }
  0x42   : > { %1442 = vmatpush3.bf16.msra.mxu1 %v1583_v15 }
  0x43   : > { %1394 = vmatpush3.bf16.msra.mxu0 %v1584_v16  ;;  %1443 = vmatprep.subr.bf16.mxu1 %v1693_v2 }
  0x44   : > { %1395 = vmatprep.subr.bf16.mxu0 %v1585_v17 }
  0x46   : > { %1444 = vmatpush3.bf16.msra.mxu1 %v1586_v18 }
  0x47   : > { %1396 = vmatpush3.bf16.msra.mxu0 %v1587_v19  ;;  %1445 = vmatprep.subr.bf16.mxu1 %v1693_v2 }
  0x48   : > { %1397 = vmatprep.subr.bf16.mxu0 %v1588_v20 }
  0x4a   : > { %1446 = vmatpush3.bf16.msra.mxu1 %v1589_v21 }
  0x4b   : > { %1398 = vmatpush3.bf16.msra.mxu0 %v1590_v22  ;;  %1447 = vmatprep.subr.bf16.mxu1 %v1693_v2 }
  0x4c   : > { %1399 = vmatprep.subr.bf16.mxu0 %v1591_v24 }
  0x4e   : > { %1448 = vmatpush3.bf16.msra.mxu1 %v1592_v26 }
  0x4f   : > { %1400 = vmatpush3.bf16.msra.mxu0 %v1593_v27 }
  0x51   : > { %1450 = vmatmul.mubr.bf16.vlgmr.msra.gmra.mxu1 %v1596_v28 }
  0x52   : > { %581 = vmatmul.mubr.bf16.vlgmr.msra.gmra.mxu0 %v1334_v29 }
 0x111   : > { %v622_v30 = vpop.f32.mrf.mxu1 }
 0x112   : > { %v1401_v31 = vpop.f32.mrf.mxu0 }
 0x113   : > { %v1451_v32 = vpop.f32.mrf.mxu1 }
 0x114   : > { %v1402_v33 = vpop.f32.mrf.mxu0 }
 0x115   : > { %v1403_v34 = vadd.f32 %v1402_v33, %v1401_v31  ;;  %v625_v35 = vpop.f32.mrf.mxu1 }
 0x116   : > { %v1404_v37 = vpop.f32.mrf.mxu0 }
 0x117   : > { %v623_v38 = vadd.f32 %v1403_v34, %v622_v30  ;;  %v1452_v39 = vpop.f32.mrf.mxu1  ;;  %633 = sbr.rel (%p1361_p7) target bundleno = 871 (0x367), region = 56 }
 0x118   : > { %v1405_v40 = vpop.f32.mrf.mxu0 }
 0x119   : > { %v628_v41 = vadd.f32 %v623_v38, %v342_v36 }
 0x11b   : > { %629 = vst [vmem:[#allocation2] sm:$0xff] %v628_v41 }
 0x11c   : > { %v659_v42 = vld [vmem:[%s2033_s3 + $0x78] sm:$0xff]  ;;  %v1695_v43 = vmov 0.0   ;;  %v658_v44 = vld [vmem:[%s2033_s3 + $0x70] sm:$0xff]  ;;  %vm1696_vm1 = vmmov 0   ;;  %v657_v45 = vld [vmem:[%s2033_s3 + $0x68] sm:$0xff] }
 0x11d   : > { %1453 = vmatprep.subr.mxu0 %v1695_v43  ;;  %1485 = vmatprep.mubr.msk.f32.mxu0 %vm1696_vm1, %v1695_v43  ;;  %v656_v46 = vld [vmem:[%s2033_s3 + $0x60] sm:$0xff]  ;;  %v655_v47 = vld [vmem:[%s2033_s3 + $0x58] sm:$0xff]  ;;  %v654_v48 = vld [vmem:[%s2033_s3 + $0x50] sm:$0xff]  ;;  %v1697_v7 = vmov 2102212464  }
 0x11e   : > { %1454 = vmatpush3.msra.mxu0 %v659_v42  ;;  %v653_v49 = vld [vmem:[%s2033_s3 + $0x48] sm:$0xff]  ;;  %v652_v50 = vld [vmem:[%s2033_s3 + $0x40] sm:$0xff]  ;;  %v651_v51 = vld [vmem:[%s2033_s3 + $0x38] sm:$0xff]  ;;  %v1698_v9 = vmov 920167782  }
 0x11f   : > { %1455 = vmatprep.subr.mxu0 %v1695_v43  ;;  %v650_v52 = vld [vmem:[%s2033_s3 + $0x30] sm:$0xff]  ;;  %v649_v53 = vld [vmem:[%s2033_s3 + $0x28] sm:$0xff]  ;;  %v648_v54 = vld [vmem:[%s2033_s3 + $0x20] sm:$0xff]  ;;  %v1699_v14 = vmov 1326507024  }
 0x120   : > { %1456 = vmatpush3.msra.mxu0 %v658_v44  ;;  %v1362_v56 = vld [vmem:[%s2032_s2] ss:$0 sm:$0xff]  ;;  %v647_v57 = vld [vmem:[%s2033_s3 + $0x18] sm:$0xff]  ;;  %v646_v58 = vld [vmem:[%s2033_s3 + $0x10] sm:$0xff]  ;;  %v1700_v16 = vmov 683565275  }
 0x121   : > { %1457 = vmatprep.subr.mxu0 %v1695_v43  ;;  %v645_v60 = vld [vmem:[%s2033_s3 + $0x8] sm:$0xff]  ;;  %v644_v61 = vld [vmem:[%s2033_s3] sm:$0xff]  ;;  %v1701_v18 = vmov 2475754826   ;;  %v1702_v21 = vmov 2131351028  }
 0x122   : > { %1458 = vmatpush3.msra.mxu0 %v657_v45  ;;  %v634_v55 = vld [vmem:[#allocation2] sm:$0xff] }
 0x123   : > { %1459 = vmatprep.subr.mxu0 %v1695_v43  ;;  %v642_v59 = vadd.f32 %v1362_v56, %v634_v55  ;;  %v1899_v63 = vld [vmem:[%s2035_s5] sm:$0xff] }
 0x124   : > { %1460 = vmatpush3.msra.mxu0 %v656_v46  ;;  %v955_v0 = vand.u32 2139095040, %v1899_v63  ;;  %v952_v11 = vand.u32 2147483647, %v1899_v63  ;;  %vm954_vm0 = vcmp.lt.s32.totalorder %v1899_v63, 0 }
 0x125   : > { %1461 = vmatprep.subr.mxu0 %v1695_v43  ;;  %v643_v62 = vmax.f32 %v642_v59, 0.0 }
 0x126   : > { %1462 = vmatpush3.msra.mxu0 %v655_v47  ;;  %v956_v1 = vshrl.u32 %v955_v0, 23  ;;  %v959_v26 = vand.u32 8388607, %v952_v11  ;;  %vm1983_vm1 = vcmp.le.f32.partialorder %v952_v11, 0.7853982 }
 0x127   : > { %1463 = vmatprep.subr.mxu0 %v1695_v43 }
 0x128   : > { %1464 = vmatpush3.msra.mxu0 %v654_v48  ;;  %v1372_v2 = vadd.s32 4294967169, %v956_v1  ;;  %v960_v32 = vor.u32 8388608, %v959_v26 }
 0x129   : > { %1465 = vmatprep.subr.mxu0 %v1695_v43 }
 0x12a   : > { %1466 = vmatpush3.msra.mxu0 %v653_v49  ;;  %v962_v3 = vadd.s32 1, %v1372_v2  ;;  %v1000_v38 = vshll.u32 %v960_v32, 8 }
 0x12b   : > { %1467 = vmatprep.subr.mxu0 %v1695_v43 }
 0x12c   : > { %1468 = vmatpush3.msra.mxu0 %v652_v50  ;;  %vm963_vm2 = vcmp.gt.s32.totalorder %v962_v3, 0 }
 0x12d   : > { %1469 = vmatprep.subr.mxu0 %v1695_v43  ;;  %v964_v4 = vsel %vm963_vm2, %v962_v3, 0 }
 0x12e   : > { %1470 = vmatpush3.msra.mxu0 %v651_v51  ;;  %v966_v5 = vand.u32 31, %v964_v4  ;;  %v965_v12 = vshrl.u32 %v964_v4, 5 }
 0x12f   : > { %1471 = vmatprep.subr.mxu0 %v1695_v43 }
 0x130   : > { %1472 = vmatpush3.msra.mxu0 %v650_v52  ;;  %v967_v6 = vsub.s32 32, %v966_v5  ;;  %v978_v8 = vshll.u32 %v1697_v7, %v966_v5  ;;  %v981_v13 = vshll.u32 %v1698_v9, %v966_v5  ;;  %v969_v17 = vshll.u32 %v1700_v16, %v966_v5 }
 0x131   : > { %1473 = vmatprep.subr.mxu0 %v1695_v43  ;;  %v972_v20 = vshll.u32 %v1701_v18, %v966_v5  ;;  %v975_v23 = vshll.u32 %v1702_v21, %v966_v5  ;;  %vm987_vm3 = vcmp.lt.s32.totalorder %v965_v12, 4  ;;  %vm984_vm4 = vcmp.lt.s32.totalorder %v965_v12, 1 }
 0x132   : > { %1474 = vmatpush3.msra.mxu0 %v649_v53  ;;  %v979_v10 = vshrl.u32 %v1698_v9, %v967_v6  ;;  %v982_v15 = vshrl.u32 %v1699_v14, %v967_v6  ;;  %v970_v19 = vshrl.u32 %v1701_v18, %v967_v6  ;;  %v973_v22 = vshrl.u32 %v1702_v21, %v967_v6 }
 0x133   : > { %1475 = vmatprep.subr.mxu0 %v1695_v43  ;;  %v976_v24 = vshrl.u32 %v1697_v7, %v967_v6  ;;  %vm986_vm5 = vcmp.lt.s32.totalorder %v965_v12, 3  ;;  %vm985_vm6 = vcmp.lt.s32.totalorder %v965_v12, 2 }
 0x134   : > { %1476 = vmatpush3.msra.mxu0 %v648_v54  ;;  %v980_v25 = vor.u32 %v979_v10, %v978_v8  ;;  %v983_v27 = vor.u32 %v982_v15, %v981_v13  ;;  %v971_v28 = vor.u32 %v970_v19, %v969_v17  ;;  %v974_v29 = vor.u32 %v973_v22, %v972_v20 }
 0x135   : > { %1477 = vmatprep.subr.mxu0 %v1695_v43  ;;  %v977_v30 = vor.u32 %v976_v24, %v975_v23 }
 0x136   : > { %1478 = vmatpush3.msra.mxu0 %v647_v57  ;;  %v993_v31 = vsel %vm987_vm3, %v980_v25, 920167782  ;;  %v997_v33 = vsel %vm987_vm3, %v983_v27, 1326507024  ;;  %v992_v34 = vsel %vm984_vm4, %v971_v28, %v974_v29 }
 0x137   : > { %1479 = vmatprep.subr.mxu0 %v1695_v43  ;;  %v994_v35 = vsel %vm986_vm5, %v977_v30, %v993_v31  ;;  %v996_v36 = vsel %vm984_vm4, %v974_v29, %v977_v30  ;;  %v998_v37 = vsel %vm986_vm5, %v980_v25, %v997_v33  ;;  %v989_v46 = vsel %vm987_vm3, %v977_v30, 2102212464 }
 0x138   : > { %1480 = vmatpush3.msra.mxu0 %v646_v58  ;;  %v995_v39 = vsel %vm985_vm6, %v992_v34, %v994_v35  ;;  %v999_v40 = vsel %vm985_vm6, %v996_v36, %v998_v37  ;;  %v990_v48 = vsel %vm986_vm5, %v974_v29, %v989_v46  ;;  %v1363_v58 = vld [vmem:[%s2034_s4] ss:$0 sm:$0xff] }
 0x139   : > { %1481 = vmatprep.subr.mxu0 %v1695_v43  ;;  %v1923_v41 = vmul.u32.u64.low %v1000_v38, %v995_v39  ;;  %v1924_v42 = vmul.u32.u64.high %v1000_v38, %v995_v39, %v1923_v41  ;;  %v1928_v44 = vmul.u32.u64.low %v1000_v38, %v999_v40  ;;  %v1929_v45 = vmul.u32.u64.high %v1000_v38, %v999_v40, %v1928_v44 }
 0x13a   : > { %1482 = vmatpush3.msra.mxu0 %v645_v60 }
 0x13b   : > { %1483 = vmatprep.subr.mxu0 %v1695_v43  ;;  %v968_v43 = vshrl.u32 %v1700_v16, %v967_v6  ;;  %v1010_v50 = vadd.s32 1, %v1924_v42  ;;  %vm1009_vm7 = vc.u32 %v1929_v45, %v1923_v41 }
 0x13c   : > { %1484 = vmatpush3.msra.mxu0 %v644_v61 }
 0x13d   : > { %1486 = vmatmul.mubr.f32.vlgmr.msra.gmra.mxu0 %v643_v62  ;;  %v988_v47 = vsel %vm984_vm4, %v968_v43, %v971_v28  ;;  %v1011_v52 = vsel %vm1009_vm7, %v1010_v50, %v1924_v42 }
 0x13e   : > { %v991_v49 = vsel %vm985_vm6, %v988_v47, %v990_v48 }
 0x13f   : > { %v1007_v51 = vmul.u32 %v1000_v38, %v991_v49 }
 0x141   : > { %v1012_v53 = vadd.s32 %v1011_v52, %v1007_v51 }
 0x143   : > { %v1013_v54 = vadd.s32 536870912, %v1012_v53 }
 0x145   : > { %v1939_v55 = vshrl.u32 %v1013_v54, 30 }
 0x147   : > { %v1015_v56 = vshll.u32 %v1939_v55, 30 }
 0x149   : > { %v1942_v57 = vsub.s32 %v1012_v53, %v1015_v56  ;;  %v1008_v56 = vadd.s32 %v1923_v41, %v1929_v45 }
 0x14b   : > { %v1018_v60 = vsub.s32 0, %v1942_v57 }
 0x14d   : > { %v1373_v1 = vmin.u32 %v1018_v60, %v1942_v57 }
 0x14f   : > { %v1020_v4 = vclz %v1373_v1 }
 0x151   : > { %v1374_v10 = vadd.s32 4294967294, %v1020_v4 }
 0x153   : > { %vm1375_vm9 = vcmp.lt.s32.totalorder %v1374_v10, 0 }
 0x154   : > { %v1023_v37 = vsel %vm1375_vm9, 0, %v1374_v10 }
 0x155   : > { %v1028_v52 = vsub.s32 4294967266, %v1023_v37 }
 0x1fd   : > { %v733_v59 = vpop.f32.mrf.mxu0 }
 0x1fe   : > { %v1948_v61 = vadd.f32 %v1363_v58, %v733_v59  ;;  %v1024_v58 = vsub.s32 32, %v1023_v37  ;;  %v1029_v59 = vadd.s32 127, %v1028_v52 }
 0x1ff   : > { %v1487_v62 = vpop.f32.mrf.mxu0 }
 0x200   : > { %v748_v0 = vand.u32 2139095040, %v1948_v61  ;;  %v745_v6 = vand.u32 2147483647, %v1948_v61  ;;  %v1026_v1 = vshrl.u32 %v1008_v56, %v1024_v58  ;;  %vm747_vm2 = vcmp.lt.s32.totalorder %v1948_v61, 0 }
 0x202   : > { %v749_v2 = vshrl.u32 %v748_v0, 23  ;;  %v752_v13 = vand.u32 8388607, %v745_v6  ;;  %v1025_v0 = vshll.u32 %v1942_v57, %v1023_v37  ;;  %vm746_vm3 = vcmp.le.f32.partialorder %v745_v6, 0.7853982 }
 0x204   : > { %v1364_v3 = vadd.s32 4294967169, %v749_v2  ;;  %v753_v30 = vor.u32 8388608, %v752_v13  ;;  %v1030_v2 = vshll.u32 %v1029_v59, 23 }
 0x206   : > { %v755_v5 = vadd.s32 1, %v1364_v3  ;;  %v793_v40 = vshll.u32 %v753_v30, 8 }
 0x208   : > { %vm756_vm8 = vcmp.gt.s32.totalorder %v755_v5, 0 }
 0x209   : > { %v757_v8 = vsel %vm756_vm8, %v755_v5, 0  ;;  %v1027_v5 = vor.u32 %v1026_v1, %v1025_v0  ;;  %v1703_v1 = vmov 0  }
 0x20a   : > { %v759_v12 = vand.u32 31, %v757_v8  ;;  %v758_v17 = vshrl.u32 %v757_v8, 5  ;;  %v1031_v8 = vor.u32 4788187, %v1030_v2  ;;  %1597 = vset.pattern.permute.xlu1 %v1703_v1 }
 0x20c   : > { %v760_v15 = vsub.s32 32, %v759_v12  ;;  %v762_v19 = vshll.u32 %v1700_v16, %v759_v12  ;;  %v765_v20 = vshll.u32 %v1701_v18, %v759_v12  ;;  %v768_v24 = vshll.u32 %v1702_v21, %v759_v12 }
 0x20d   : > { %v771_v26 = vshll.u32 %v1697_v7, %v759_v12  ;;  %v774_v28 = vshll.u32 %v1698_v9, %v759_v12  ;;  %vm777_vm10 = vcmp.lt.s32.totalorder %v758_v17, 1  ;;  %vm780_vm11 = vcmp.lt.s32.totalorder %v758_v17, 4 }
 0x20e   : > { %v763_v22 = vshrl.u32 %v1701_v18, %v760_v15  ;;  %v766_v23 = vshrl.u32 %v1702_v21, %v760_v15  ;;  %v769_v25 = vshrl.u32 %v1697_v7, %v760_v15  ;;  %v772_v27 = vshrl.u32 %v1698_v9, %v760_v15 }
 0x20f   : > { %v775_v29 = vshrl.u32 %v1699_v14, %v760_v15  ;;  %v761_v7 = vshrl.u32 %v1700_v16, %v760_v15  ;;  %vm779_vm12 = vcmp.lt.s32.totalorder %v758_v17, 3  ;;  %vm778_vm13 = vcmp.lt.s32.totalorder %v758_v17, 2 }
 0x210   : > { %v764_v31 = vor.u32 %v763_v22, %v762_v19  ;;  %v767_v32 = vor.u32 %v766_v23, %v765_v20  ;;  %v770_v33 = vor.u32 %v769_v25, %v768_v24  ;;  %v773_v34 = vor.u32 %v772_v27, %v771_v26 }
 0x211   : > { %v776_v18 = vor.u32 %v775_v29, %v774_v28  ;;  %v1032_v13 = vand.u32 2147483647, %v1031_v8  ;;  %v1034_v15 = vcvt.s32.f32 %v1027_v5 }
 0x212   : > { %v782_v35 = vsel %vm780_vm11, %v770_v33, 2102212464  ;;  %v785_v21 = vsel %vm777_vm10, %v764_v31, %v767_v32  ;;  %v789_v36 = vsel %vm777_vm10, %v767_v32, %v770_v33  ;;  %v786_v38 = vsel %vm780_vm11, %v773_v34, 920167782 }
 0x213   : > { %v790_v9 = vsel %vm780_vm11, %v776_v18, 1326507024  ;;  %v787_v14 = vsel %vm779_vm12, %v770_v33, %v786_v38  ;;  %v781_v42 = vsel %vm777_vm10, %v761_v7, %v764_v31  ;;  %v783_v43 = vsel %vm779_vm12, %v767_v32, %v782_v35 }
 0x214   : > { %v791_v39 = vsel %vm779_vm12, %v773_v34, %v790_v9  ;;  %v788_v44 = vsel %vm778_vm13, %v785_v21, %v787_v14  ;;  %v784_v51 = vsel %vm778_vm13, %v781_v42, %v783_v43  ;;  %v1035_v20 = vmul.f32 %v1034_v15, %v1032_v13 }
 0x215   : > { %v792_v46 = vsel %vm778_vm13, %v789_v36, %v791_v39  ;;  %v1970_v49 = vmul.u32.u64.low %v793_v40, %v788_v44  ;;  %v1971_v50 = vmul.u32.u64.high %v793_v40, %v788_v44, %v1970_v49  ;;  %v800_v53 = vmul.u32 %v793_v40, %v784_v51 }
 0x216   : > { %v1967_v47 = vmul.u32.u64.low %v793_v40, %v792_v46  ;;  %v1968_v48 = vmul.u32.u64.high %v793_v40, %v792_v46, %v1967_v47  ;;  %v1036_v22 = vxor.u32 2147483648, %v1035_v20  ;;  %v1038_v35 = vsub.s32 4, %v1939_v55 }
 0x217   : > { %v803_v16 = vadd.s32 1, %v1971_v50  ;;  %v738_v13 = vsub.f32 %v1948_v61, %v1899_v63 }
 0x218   : > { %vm802_vm14 = vc.u32 %v1968_v48, %v1970_v49  ;;  %v801_v23 = vadd.s32 %v1970_v49, %v1968_v48  ;;  %v1037_v29 = vsel %vm954_vm0, %v1036_v22, %v1035_v20  ;;  %v1039_v36 = vsel %vm954_vm0, %v1038_v35, %v1939_v55 }
 0x219   : > { %v804_v54 = vsel %vm802_vm14, %v803_v16, %v1971_v50  ;;  %v1040_v33 = vsel %vm1983_vm1, %v1899_v63, %v1037_v29  ;;  %v1041_v9 = vsel %vm1983_vm1, 0, %v1039_v36  ;;  %vm837_vm0 = vweird.f32 %v1948_v61 }
 0x21a   : > { %v805_v60 = vadd.s32 %v804_v54, %v800_v53  ;;  %1599 = vcosq.f32 %v1040_v33  ;;  %v1045_v39 = vadd.s32 3, %v1041_v9  ;;  %v1149_v43 = vand.u32 3, %v1041_v9 }
 0x21b   : > { %1601 = vsinq.f32 %v1040_v33  ;;  %vm1044_vm1 = vweird.f32 %v1899_v63 }
 0x21c   : > { %v806_v62 = vadd.s32 536870912, %v805_v60  ;;  %v1046_v55 = vand.u32 3, %v1045_v39  ;;  %vm1154_vm4 = vcmp.eq.s32.totalorder %v1149_v43, 2  ;;  %vm1151_vm6 = vcmp.eq.s32.totalorder %v1149_v43, 0 }
 0x21d   : > { %vm1150_vm8 = vcmp.lt.s32.totalorder %v1149_v43, 2 }
 0x21e   : > { %v807_v3 = vshrl.u32 %v806_v62, 30  ;;  %vm1048_vm5 = vcmp.eq.s32.totalorder %v1046_v55, 0  ;;  %vm1051_vm7 = vcmp.eq.s32.totalorder %v1046_v55, 2  ;;  %vm1047_vm9 = vcmp.lt.s32.totalorder %v1046_v55, 2 }
 0x220   : > { %v808_v4 = vshll.u32 %v807_v3, 30  ;;  %v831_v37 = vsub.s32 4, %v807_v3 }
 0x222   : > { %v809_v10 = vsub.s32 %v805_v60, %v808_v4  ;;  %v832_v14 = vsel %vm747_vm2, %v831_v37, %v807_v3 }
 0x223   : > { %v834_v40 = vsel %vm746_vm3, 0, %v832_v14 }
 0x224   : > { %v811_v12 = vsub.s32 0, %v809_v10  ;;  %v838_v46 = vadd.s32 3, %v834_v40  ;;  %v942_v6 = vand.u32 3, %v834_v40 }
 0x226   : > { %v1365_v17 = vmin.u32 %v811_v12, %v809_v10  ;;  %v839_v49 = vand.u32 3, %v838_v46  ;;  %vm944_vm10 = vcmp.eq.s32.totalorder %v942_v6, 0  ;;  %vm947_vm11 = vcmp.eq.s32.totalorder %v942_v6, 2 }
 0x227   : > { %v1600_v42 = vpop.eup %1599  ;;  %vm943_vm14 = vcmp.lt.s32.totalorder %v942_v6, 2  ;;  %v1204_v46 = vlaneseq }
 0x228   : > { %v813_v19 = vclz %v1365_v17  ;;  %v1602_v44 = vpop.eup %1601  ;;  %v1052_v48 = vxor.u32 2147483648, %v1600_v42  ;;  %vm844_vm12 = vcmp.eq.s32.totalorder %v839_v49, 2  ;;  %vm841_vm13 = vcmp.eq.s32.totalorder %v839_v49, 0 }
 0x229   : > { %v1049_v47 = vxor.u32 2147483648, %v1602_v44  ;;  %v1705_v17 = vmov 1  }
 0x22a   : > { %v1366_v41 = vadd.s32 4294967294, %v813_v19  ;;  %v1156_v51 = vsel %vm1154_vm4, %v1052_v48, %v1602_v44  ;;  %v1053_v56 = vsel %vm1051_vm7, %v1052_v48, %v1602_v44  ;;  %1598 = vset.pattern.permute.xlu0 %v1705_v17  ;;  %v739_v19 = vmul.f32 %v738_v13, %v738_v13 }
 0x22b   : > { %v1153_v53 = vsel %vm1151_vm6, %v1600_v42, %v1049_v47  ;;  %v1050_v54 = vsel %vm1048_vm5, %v1600_v42, %v1049_v47  ;;  %v1205_v47 = vand.u32 127, %v1204_v46 }
 0x22c   : > { %vm1367_vm15 = vcmp.lt.s32.totalorder %v1366_v41, 0  ;;  %v1157_v4 = vsel %vm1150_vm8, %v1153_v53, %v1156_v51 }
 0x22d   : > { %v816_v45 = vsel %vm1367_vm15, 0, %v1366_v41  ;;  %vm840_vm15 = vcmp.lt.s32.totalorder %v839_v49, 2  ;;  %v1158_v12 = vsel %vm1044_vm1, nan, %v1157_v4  ;;  %vm1206_vm4 = vcmp.ge.s32.totalorder %v1205_v47, 2 }
 0x22e   : > { %v817_v57 = vsub.s32 32, %v816_v45  ;;  %v821_v24 = vsub.s32 4294967266, %v816_v45  ;;  %v818_v25 = vshll.u32 %v809_v10, %v816_v45  ;;  %v1054_v10 = vsel %vm1047_vm9, %v1050_v54, %v1053_v56 }
 0x22f   : > { %v1055_v15 = vsel %vm1044_vm1, nan, %v1054_v10 }
 0x230   : > { %v819_v26 = vshrl.u32 %v801_v23, %v817_v57  ;;  %v822_v27 = vadd.s32 127, %v821_v24  ;;  %v1171_v24 = vsub.f32 0.0, %v1158_v12 }
 0x232   : > { %v820_v30 = vor.u32 %v819_v26, %v818_v25  ;;  %v823_v31 = vshll.u32 %v822_v27, 23  ;;  %v1177_v26 = vsub.f32 0.0, %v1055_v15 }
 0x234   : > { %v824_v32 = vor.u32 4788187, %v823_v31  ;;  %v827_v18 = vcvt.s32.f32 %v820_v30  ;;  %v1194_v33 = vmul.f32 %v1177_v26, %v1177_v26 }
 0x236   : > { %v825_v34 = vand.u32 2147483647, %v824_v32 }
 0x238   : > { %v828_v21 = vmul.f32 %v827_v18, %v825_v34 }
 0x23a   : > { %v829_v11 = vxor.u32 2147483648, %v828_v21 }
 0x23c   : > { %v830_v7 = vsel %vm747_vm2, %v829_v11, %v828_v21  ;;  %vm1208_vm2 = vcmp.eq.s32.totalorder %v1205_v47, 3 }
 0x23d   : > { %v833_v38 = vsel %vm746_vm3, %v1948_v61, %v830_v7  ;;  %vm1207_vm3 = vcmp.eq.s32.totalorder %v1205_v47, 2 }
 0x23e   : > { %1603 = vcosq.f32 %v833_v38 }
 0x23f   : > { %1605 = vsinq.f32 %v833_v38 }
 0x24b   : > { %v1604_v50 = vpop.eup %1603 }
 0x24c   : > { %v1606_v52 = vpop.eup %1605  ;;  %v845_v16 = vxor.u32 2147483648, %v1604_v50 }
 0x24d   : > { %v842_v58 = vxor.u32 2147483648, %v1606_v52 }
 0x24e   : > { %v949_v59 = vsel %vm947_vm11, %v845_v16, %v1606_v52  ;;  %v846_v60 = vsel %vm844_vm12, %v845_v16, %v1606_v52 }
 0x24f   : > { %v946_v62 = vsel %vm944_vm10, %v1604_v50, %v842_v58  ;;  %v843_v0 = vsel %vm841_vm13, %v1604_v50, %v842_v58 }
 0x250   : > { %v950_v2 = vsel %vm943_vm14, %v946_v62, %v949_v59  ;;  %v847_v3 = vsel %vm840_vm15, %v843_v0, %v846_v60 }
 0x251   : > { %v951_v5 = vsel %vm837_vm0, nan, %v950_v2  ;;  %v848_v8 = vsel %vm837_vm0, nan, %v847_v3 }
 0x252   : > { %1167 = vrot.lane.b32.xlu1 %v951_v5, %s1704_s19  ;;  %1161 = vrot.lane.b32.xlu0 %v848_v8, %s1704_s19  ;;  %v1159_v20 = vsub.f32 0.0, %v951_v5  ;;  %v1165_v41 = vsub.f32 0.0, %v848_v8 }
 0x254   : > { %v1189_v25 = vmul.f32 %v1165_v41, %v1165_v41  ;;  %v1184_v34 = vmul.f32 %v1177_v26, %v1165_v41 }
 0x256   : > { %1179 = vrot.lane.b32.xlu1 %v1158_v12, %s1704_s19  ;;  %1173 = vrot.lane.b32.xlu0 %v1055_v15, %s1704_s19 }
 0x25a   : > { %741 = vrot.lane.b32.xlu0 %v739_v19, %s1706_s20 }
 0x2c4   : > { %v1168_v45 = vpop.permute.xlu1 %1167  ;;  %v1162_v22 = vpop.permute.xlu0 %1161 }
 0x2c5   : > { %v1170_v23 = vmul.f32 %v1168_v45, %v1159_v20  ;;  %v1164_v57 = vmul.f32 %v1162_v22, %v1159_v20 }
 0x2c7   : > { %v1188_v27 = vmul.f32 %v1164_v57, %v1164_v57  ;;  %v1191_v29 = vmul.f32 %v1170_v23, %v1170_v23 }
 0x2c8   : > { %v1180_v28 = vpop.permute.xlu1 %1179  ;;  %v1174_v63 = vpop.permute.xlu0 %1173 }
 0x2c9   : > { %v1190_v30 = vadd.f32 %v1189_v25, %v1188_v27  ;;  %v1182_v31 = vmul.f32 %v1180_v28, %v1171_v24  ;;  %v1176_v32 = vmul.f32 %v1174_v63, %v1171_v24 }
 0x2cb   : > { %v1192_v18 = vadd.f32 %v1191_v29, %v1190_v30  ;;  %v1186_v35 = vmul.f32 %v1182_v31, %v1170_v23  ;;  %v1183_v21 = vmul.f32 %v1176_v32, %v1164_v57  ;;  %v1196_v11 = vmul.f32 %v1182_v31, %v1182_v31 }
 0x2cc   : > { %v1193_v36 = vmul.f32 %v1176_v32, %v1176_v32  ;;  %v742_v37 = vpop.permute.xlu0 %741 }
 0x2cd   : > { %v1185_v7 = vadd.f32 %v1184_v34, %v1183_v21  ;;  %v744_v38 = vadd.f32 %v742_v37, %v739_v19 }
 0x2ce   : > { %v1195_v9 = vadd.f32 %v1194_v33, %v1193_v36 }
 0x2cf   : > { %1211 = vperm.xlu1 %1597, %v744_v38   ;;  %v1187_v14 = vadd.f32 %v1186_v35, %v1185_v7 }
 0x2d0   : > { %v1197_v39 = vadd.f32 %v1196_v11, %v1195_v9 }
 0x2d2   : > { %v1198_v40 = vmul.f32 %v1197_v39, %v1192_v18 }
 0x2d4   : > { %v1199_v42 = vadd.f32 1e-12, %v1198_v40 }
 0x2d6   : > { %1607 = vrsqrt.f32 %v1199_v42 }
 0x2e3   : > { %v1608_v43 = vpop.eup %1607 }
 0x2e4   : > { %v1201_v55 = vmul.f32 %v1608_v43, %v1187_v14 }
 0x2e6   : > { %v1380_v44 = vclamps-f32 %v1201_v55, 0.9999999 }
 0x2e8   : > { %1217 = vperm.xlu0 %1598, %v1380_v44  }
 0x34a   : > { %v1212_v48 = vpop.permute.xlu1 %1211 }
 0x34b   : > { %v1214_v6 = vsel %vm1208_vm2, %v1212_v48, 0.0 }
 0x363   : > { %v1218_v49 = vpop.permute.xlu0 %1217 }
 0x364   : > { %v1220_v50 = vsel %vm1207_vm3, %v1218_v49, %v1214_v6 }
 0x365   : > { %v1221_v51 = vsel %vm1206_vm4, %v1220_v50, %v1948_v61 }
 0x366   : > { %1222 = vst [vmem:[%s2036_s6] sm:$0xff] %v1221_v51 }
 0x367 PF: > { %s19_s26 = sadd.s32 1, %s1687_s26   ;;  %s2041_s21 = smov %s1671_s22 }
 0x368   : > { %p16_p10 = scmp.ge.s32.totalorder %s19_s26, 4   ;;  %s2042_s22 = smov %s1675_s23 }
 0x369   : > { %s2043_s23 = smov %s1787_s8  ;;  %s2044_s24 = smov %s1683_s25 }
 0x36a   : > { %s2045_s25 = smov %s2047_s28  ;;  %18 = sbr.rel (!%p16_p10) target bundleno = 4 (0x4), region = 98 }
 0x36f   :  { %1242 = vsyncpa [#allocation4], 1 }
 0x370   :  { %1244 = vsyncpa [#allocation4 + $0x1], 1 }

</bundles_post_ra>
